<compile_context>
chip_gen: v7x
topology: tpu7x:2x2x1
jax: 0.10.0
libtpu: 0.0.40
codegen_flags: <defaults>
</compile_context>

<pallas_src>
import jax
import jax.numpy as jnp
from jax import lax
from jax.experimental import pallas as pl
from jax.experimental.pallas import tpu as pltpu


def _cls_kernel(x_ref, w_ref, b_ref, o_ref):
    # x_ref: (C_in, TL)  channels-first sequence tile (NCL layout, no transpose)
    # w_ref: (C_in, C)   collapsed weight (resident in VMEM across grid steps)
    # b_ref: (1, C)      collapsed bias (f32)
    # o_ref: (TL, C)     output tile, already in (L, C) = permuted layout
    y = lax.dot_general(
        x_ref[...], w_ref[...],
        dimension_numbers=(((0,), (0,)), ((), ())),   # contract channel axis
        preferred_element_type=jnp.float32,
    )                                                 # (TL, C) f32
    # NOTE: C (< 128 lanes) means masked partial stores; secondary since the
    # 4E-wide input read dominates HBM traffic (review item #7: leave as-is
    # unless a bundle dump shows the vst slot binding).
    o_ref[...] = (y + b_ref[...]).astype(o_ref.dtype)


def _pick_tile_l(l_pad, batch, tile_l):
    """Largest multiple of 128 that divides l_pad and is <= tile_l; shrink if
    needed so the total grid has >= 2 steps (v7x dual-TC sharding)."""
    divisors = [t for t in range(128, l_pad + 1, 128) if l_pad % t == 0]
    fits = [t for t in divisors if t <= tile_l]
    tl = max(fits) if fits else 128
    if batch * (l_pad // tl) < 2:
        smaller = [t for t in divisors if t < tl]
        if smaller:
            tl = max(smaller)
    return tl


def classification_module_forward(concat_feature, w_fuse, b_fuse, w_pred, b_pred,
                                  *, tile_l=4096):
    """concat_feature: (B, 4E, L) f32 or bf16, PyTorch NCL layout.
    w_fuse: (E, 4E) conv1d weight (kernel dim squeezed), b_fuse: (E,)
    w_pred: (C, E),                                      b_pred: (C,)
    Returns (B, L, C), matching x.permute(0, 2, 1) in PyTorch.
    """
    B, C_in, L = concat_feature.shape
    E = w_fuse.shape[0]
    C = w_pred.shape[0]
    assert w_fuse.shape == (E, C_in) and w_pred.shape == (C, E)

    # TODO(synk): nn.Dropout is identity in eval mode; training-mode dropout
    # (which would invalidate the conv fusion) is not implemented.
    # Collapse the two 1x1 convs into one affine map.  NOTE: this changes the
    # rounding order vs. the two-matmul reference (well within 1e-4 here).
    w1 = jnp.transpose(w_fuse)                                        # (4E, E)
    w2 = jnp.transpose(w_pred)                                        # (E, C)
    W = jnp.dot(w1, w2, preferred_element_type=jnp.float32)           # (4E, C)
    b = (jnp.dot(b_fuse.astype(jnp.float32), w2,
                 preferred_element_type=jnp.float32)
         + b_pred.astype(jnp.float32)).reshape(1, C)                  # (1, C) f32
    # Match the (tiny) weight dtype to the activations so a bf16 producer gets
    # a native bf16 x bf16 -> f32 MXU matmul (no in-kernel promotion).
    W = W.astype(concat_feature.dtype)

    # Ragged-L handling: pad L to a multiple of 128 (keeps every tile aligned
    # and VMEM use shape-independent), slice the output afterwards.
    L_pad = int(pl.cdiv(L, 128)) * 128
    x = concat_feature
    if L_pad != L:
        x = jnp.pad(concat_feature, ((0, 0), (0, 0), (0, L_pad - L)))

    TL = _pick_tile_l(L_pad, B, tile_l)
    grid = (B, L_pad // TL)

    itemsize = jnp.dtype(x.dtype).itemsize
    out_itemsize = itemsize
    c_lanes = int(pl.cdiv(C, 128)) * 128   # output/weight lane padding

    flops = 2 * B * L_pad * C_in * C
    bytes_accessed = (B * C_in * L_pad + B * L_pad * C) * itemsize + (C_in * C + C) * 4

    # Double-buffered input tile + double-buffered (lane-padded) output tile
    # + resident weight/bias.
    vmem_est = (2 * C_in * TL * itemsize
                + 2 * TL * c_lanes * out_itemsize
                + C_in * c_lanes * itemsize
                + c_lanes * 4)
    compiler_kwargs = dict(dimension_semantics=("parallel", "parallel"))
    if vmem_est > 12 * 1024 * 1024:
        compiler_kwargs["vmem_limit_bytes"] = min(int(vmem_est * 2), 100 * 1024 * 1024)

    out = pl.pallas_call(
        _cls_kernel,
        out_shape=jax.ShapeDtypeStruct((B, L_pad, C), concat_feature.dtype),
        grid_spec=pltpu.PrefetchScalarGridSpec(
            num_scalar_prefetch=0,
            grid=grid,
            in_specs=[
                # (B, 4E, L_pad): squeeze batch, full channel axis, TL-wide
                # sequence tile.  (Optional v7x knob: pipeline_mode=pl.Buffered(3).)
                pl.BlockSpec((None, C_in, TL), lambda bi, li: (bi, 0, li)),
                # Collapsed weight / bias stay resident across all grid steps.
                pl.BlockSpec((C_in, C), lambda bi, li: (0, 0)),
                pl.BlockSpec((1, C), lambda bi, li: (0, 0)),
            ],
            out_specs=pl.BlockSpec((None, TL, C), lambda bi, li: (bi, li, 0)),
        ),
        compiler_params=pltpu.CompilerParams(**compiler_kwargs),
        cost_estimate=pl.CostEstimate(
            flops=flops, transcendentals=0, bytes_accessed=bytes_accessed),
    )(x, W, b)

    if L_pad != L:
        out = out[:, :L, :]
    return out


def _reference(concat_feature, w_fuse, b_fuse, w_pred, b_pred):
    # Plain-JAX reference: the original two-conv path (unfused), then permute.
    x_t = jnp.transpose(concat_feature.astype(jnp.float32), (0, 2, 1))  # (B, L, 4E)
    ref = jnp.einsum("blc,ec->ble", x_t, w_fuse) + b_fuse               # (B, L, E)
    ref = jnp.einsum("ble,ne->bln", ref, w_pred) + b_pred               # (B, L, C)
    return ref


if __name__ == "__main__":
    embedding_dim = 32
    num_classes = 8
    C_in = embedding_dim * 4  # 128

    key = jax.random.PRNGKey(0)
    kx1, kx2, kw1, kb1, kw2, kb2 = jax.random.split(key, 6)

    # Deterministic parameters (Conv1d kernel_size=1 weights, kernel dim squeezed).
    w_fuse = jax.random.normal(kw1, (embedding_dim, C_in), dtype=jnp.float32) * 0.05
    b_fuse = jax.random.normal(kb1, (embedding_dim,), dtype=jnp.float32) * 0.05
    w_pred = jax.random.normal(kw2, (num_classes, embedding_dim), dtype=jnp.float32) * 0.05
    b_pred = jax.random.normal(kb2, (num_classes,), dtype=jnp.float32) * 0.05

    # Case 1: small ragged L (exercises the pad-to-128 path).
    B1, L1 = 2, 16
    x1 = jax.random.normal(kx1, (B1, C_in, L1), dtype=jnp.float32)
    out1 = jax.block_until_ready(
        classification_module_forward(x1, w_fuse, b_fuse, w_pred, b_pred))
    ref1 = _reference(x1, w_fuse, b_fuse, w_pred, b_pred)
    assert out1.shape == (B1, L1, num_classes), out1.shape
    assert jnp.allclose(out1, ref1, atol=1e-4, rtol=1e-4)

    # Case 2: 128-aligned L (exercises the divisor-tiled pipelined path).
    B2, L2 = 2, 640
    x2 = jax.random.normal(kx2, (B2, C_in, L2), dtype=jnp.float32)
    out2 = jax.block_until_ready(
        classification_module_forward(x2, w_fuse, b_fuse, w_pred, b_pred))
    ref2 = _reference(x2, w_fuse, b_fuse, w_pred, b_pred)
    assert out2.shape == (B2, L2, num_classes), out2.shape
    assert jnp.allclose(out2, ref2, atol=1e-4, rtol=1e-4)

    print("KERNEL_OK")
</pallas_src>

<mosaic_0001>
module attributes {stable_mosaic.version = 11 : i64} {
  func.func @_cls_kernel(%arg0: i32, %arg1: i32, %arg2: memref<1x128x128xf32, #tpu.memory_space<vmem>>, %arg3: memref<128x8xf32, #tpu.memory_space<vmem>>, %arg4: memref<1x8xf32, #tpu.memory_space<vmem>>, %arg5: memref<1x128x8xf32, #tpu.memory_space<vmem>>) attributes {dimension_semantics = [#tpu.dimension_semantics<parallel>, #tpu.dimension_semantics<parallel>], iteration_bounds = array<i64: 2, 1>, scalar_prefetch = 0 : i64, scratch_operands = 0 : i64, tpu.core_type = #tpu.core_type<tc>, window_params = [{transform_indices = @transform_0, window_bounds = array<i64: 1, 128, 128>}, {pipeline_mode = #tpu.pipeline_mode<synchronous>, transform_indices = @transform_1, window_bounds = array<i64: 128, 8>}, {pipeline_mode = #tpu.pipeline_mode<synchronous>, transform_indices = @transform_2, window_bounds = array<i64: 1, 8>}, {transform_indices = @transform_3, window_bounds = array<i64: 1, 128, 8>}]} {
    %c0 = arith.constant 0 : index
    %c0_0 = arith.constant 0 : index
    %c0_1 = arith.constant 0 : index
    %0 = vector.load %arg2[%c0, %c0_0, %c0_1] : memref<1x128x128xf32, #tpu.memory_space<vmem>>, vector<1x128x128xf32>
    %1 = vector.shape_cast %0 : vector<1x128x128xf32> to vector<128x128xf32>
    %c0_2 = arith.constant 0 : index
    %c0_3 = arith.constant 0 : index
    %2 = vector.load %arg3[%c0_2, %c0_3] : memref<128x8xf32, #tpu.memory_space<vmem>>, vector<128x8xf32>
    %cst = arith.constant dense<0.000000e+00> : vector<128x8xf32>
    %3 = tpu.matmul %1, %2, %cst {dimension_numbers = #tpu.dot_dimension_numbers<[0], [0], [1], [1], [0, 1, 1, 1], [], []>} : vector<128x128xf32>, vector<128x8xf32>, vector<128x8xf32> -> vector<128x8xf32>
    %c0_4 = arith.constant 0 : index
    %c0_5 = arith.constant 0 : index
    %4 = vector.load %arg4[%c0_4, %c0_5] : memref<1x8xf32, #tpu.memory_space<vmem>>, vector<1x8xf32>
    %5 = vector.broadcast %4 : vector<1x8xf32> to vector<128x8xf32>
    %6 = arith.addf %3, %5 : vector<128x8xf32>
    %c0_6 = arith.constant 0 : index
    %c0_7 = arith.constant 0 : index
    %c0_8 = arith.constant 0 : index
    %7 = vector.load %arg5[%c0_6, %c0_7, %c0_8] : memref<1x128x8xf32, #tpu.memory_space<vmem>>, vector<1x128x8xf32>
    %8 = vector.shape_cast %7 : vector<1x128x8xf32> to vector<128x8xf32>
    %9 = vector.shape_cast %6 : vector<128x8xf32> to vector<1x128x8xf32>
    tpu.vector_store %arg5[%c0_6, %c0_7, %c0_8], %9 {strides = array<i32>} : memref<1x128x8xf32, #tpu.memory_space<vmem>>, vector<1x128x8xf32>,
    return
  }
  func.func @transform_0(%arg0: i32, %arg1: i32) -> (i32, i32, i32) {
    %c0_i32 = arith.constant 0 : i32
    %c0_i32_0 = arith.constant 0 : i32
    return %arg0, %c0_i32, %arg1 : i32, i32, i32
  }
  func.func @transform_1(%arg0: i32, %arg1: i32) -> (i32, i32) {
    %c0_i32 = arith.constant 0 : i32
    %c0_i32_0 = arith.constant 0 : i32
    %c0_i32_1 = arith.constant 0 : i32
    return %c0_i32, %c0_i32_0 : i32, i32
  }
  func.func @transform_2(%arg0: i32, %arg1: i32) -> (i32, i32) {
    %c0_i32 = arith.constant 0 : i32
    %c0_i32_0 = arith.constant 0 : i32
    %c0_i32_1 = arith.constant 0 : i32
    return %c0_i32, %c0_i32_0 : i32, i32
  }
  func.func @transform_3(%arg0: i32, %arg1: i32) -> (i32, i32, i32) {
    %c0_i32 = arith.constant 0 : i32
    %c0_i32_0 = arith.constant 0 : i32
    return %arg0, %arg1, %c0_i32 : i32, i32, i32
  }
}

</mosaic_0001>

<bundles_post_ra>
// kernel: tpu_custom_call.1
= control target key start
LH: loop header
LB: loop body
LE: loop exit
PB: predicated region body
PF: predicated region fallthrough
CT: control target
= control target key end

     0   :  { %8 = vsyncpa [#allocation3], 0  ;;  %s1085_s0 = inlined_call_operand.hbm [shape: f32[2,128,128], index: 0, kind: input, shape index: {}]   ;;  %s1086_s1 = inlined_call_operand.vmem [shape: f32[128,8], index: 1, kind: input, shape index: {}]   ;;  %s1087_s2 = inlined_call_operand.vmem [shape: f32[1,8], index: 2, kind: input, shape index: {}]   ;;  %s1088_s3 = inlined_call_operand.vmem [shape: f32[2,128,8], index: 3, kind: output, shape index: {}]  }
   0x1   :  { %10 = vsyncpa [#allocation3 + $0x1], 0  ;;  %s858_s12 = smov 0   ;;  %s860_s13 = smov 0  }
   0x2   :  { %s862_s14 = smov 0   ;;  %s864_s15 = smov 0  }
   0x3   :  { %s866_s16 = smov 0   ;;  %s868_s17 = smov 0  }
   0x4 LB: > { %s544_s18 = sadd.s32 4294967295, %s833_s17   ;;  %s28_s19 = sadd.s32 1, %s829_s16  ;;  %s833_s17 = sphi %s868_s17, %s16_s17   ;;  %s829_s16 = sphi %s866_s16, %s1096_s16   ;;  %s825_s15 = sphi %s864_s15, %s1095_s15   ;;  %s821_s14 = sphi %s862_s14, %s1094_s14   ;;  %s817_s13 = sphi %s860_s13, %s1093_s13   ;;  %s813_s12 = sphi %s858_s12, %s1092_s12  }
   0x5   : > { %p30_p0 = scmp.ge.s32.totalorder %s28_s19, 2  ;;  %s37_s20 = sadd.s32 1, %s821_s14 }
   0x6   : > { %p44_p1 = scmp.ne.s32.totalorder %s821_s14, %s817_s13  ;;  %p45_p2 = scmp.eq.s32.totalorder %s833_s17, 0 }
   0x7   : > { %s1098_s19 = smov (%p30_p0, %s28_s19), 0  ;;  %p50_p4 = scmp.ne.s32.totalorder %s817_s13, %s813_s12 }
   0x8   : > { %p894_p3 = por %p45_p2, %p44_p1  ;;  %s32_s22 = ssub.s32 %s829_s16, %s1098_s19 }
   0x9   : > { %p51_p5 = scmp.eq.s32.totalorder %s544_s18, 0  ;;  %p35_p6 = scmp.eq.s32.totalorder %s32_s22, 0 }
   0xa   : > { %p702_p8 = scmp.lt.s32.totalorder %s833_s17, 2  ;;  %s150_s25 = sand.u32 1, %s821_s14  }
   0xb   : > { %p901_p7 = por %p51_p5, %p50_p4  ;;  %s558_s26 = sshll.u32 %s829_s16, 11 }
   0xc   : > { %s907_s24 = scalar_select %p35_p6, %s821_s14, %s37_s20  }
   0xd   : > { %s548_s27 = sshll.u32 %s150_s25, 7  ;;  %s914_s30 = scalar_lea.hbm %s1085_s0, %s558_s26 }
   0xe   : > { %s154_s4 = scalar_lea.vmem [#allocation2], %s548_s27  ;;  %p918_p9 = pnand %p702_p8, %p894_p3 }
   0xf   : > { %s162_s5 = sshll.u32 %s154_s4, 4  ;;  %s924_s7 = scalar_lea.sflag [#allocation3], %s150_s25  ;;  %s922_s5 = int_to_ptr.vmem [resolvable:$true] %s162_s5 }
  0x10   : > { %s753_s8 = scalar_lea.hbm %s914_s30, 2048  ;;  %p755_p11 = pneg %p918_p9 }
  0x11   : > { %p754_p10 = scmp.ne.s32.totalorder %s914_s30, %s753_s8  ;;  %s758_s11 = scalar_lea.hbm %s1085_s0, 4096 }
  0x12   : > { %p759_p0 = scmp.lt.u32.totalorder %s914_s30, %s1085_s0  ;;  %p760_p1 = scmp.lt.u32.totalorder %s758_s11, %s753_s8 }
  0x13   : > { %p756_p12 = pnand %p755_p11, %p754_p10  ;;  %p762_p3 = scmp.lt.u32.totalorder %s753_s8, %s914_s30 }
  0x14   : > { %p761_p2 = por %p760_p1, %p759_p0 }
  0x15   : > { %p757_p13 = pneg %p756_p12 }
  0x16   : > { %p763_p4 = por %p762_p3, %p761_p2 }
  0x18   : > { %p764_p5 = pnand %p763_p4, %p757_p13 }
  0x1a   : > { %767 = shalt.err (!%p764_p5)
}
  0x1b   : > { %s768_s20 = scalar_lea.vmem %s922_s5, 2048  ;;  %s835_s21 = smov [#allocation2]  }
  0x1c   : > { %p769_p6 = scmp.ne.s32.totalorder %s922_s5, %s768_s20  ;;  %s773_s22 = sshll.u32 %s835_s21, 4  ;;  %s774_s22 = int_to_ptr.vmem [resolvable:$false] %s773_s22 }
  0x1d   : > { %s775_s25 = scalar_lea.vmem %s774_s22, 4096  ;;  %p776_p12 = scmp.lt.s32.totalorder %s922_s5, %s774_s22 }
  0x1e   : > { %p771_p8 = pnand %p769_p6, %p755_p11  ;;  %p777_p0 = scmp.lt.s32.totalorder %s775_s25, %s768_s20 }
  0x20   : > { %p772_p10 = pneg %p771_p8  ;;  %p778_p1 = por %p777_p0, %p776_p12 }
  0x22   : > { %p779_p2 = pnand %p778_p1, %p772_p10 }
  0x24   : > { %782 = shalt.err (!%p779_p2)
}
  0x25   : > { %s836_s26 = smov 128   ;;  %s837_s27 = smov 8  }
  0x26   : > { %701 = dma.hbm_to_vmem [thread:$0]  (!%p918_p9), %s914_s30, 2048, %s922_s5, %s924_s7, %s836_s26, %s836_s26, %s837_s27  }
  0x27   : > { %p551_p11 = scmp.ge.s32.totalorder %s833_s17, 1  ;;  %p170_p13 = scmp.lt.s32.totalorder %s833_s17, 3 }
  0x29   : > { %p171_p3 = pnand %p551_p11, %p170_p13 }
  0x2a   : > { %s176_s28 = sand.u32 (!%p171_p3), 1, %s817_s13  }
  0x2b   : > { %174 = sbr.rel (%p171_p3) target bundleno = 457 (0x1c9), region = 32  ;;  %s552_s29 = sshll.u32 (!%p171_p3), %s176_s28, 7 }
  0x2c   : > { %s177_s4 = scalar_lea.sflag (!%p171_p3), [#allocation3], %s176_s28  ;;  %s955_s8 = scalar_lea.vmem (!%p171_p3), [#allocation2], %s552_s29 }
  0x32   : > { %808 = dma.done.wait (%p901_p7), %s177_s4, 2048  }
  0x33   : > { %810 = vsyncadd (%p901_p7), %s177_s4, 4294965248  ;;  %v217_v0 = vld [vmem:[%s955_s8] sm:$0xff]  ;;  %v218_v1 = vld [vmem:[%s955_s8 + $0x8] sm:$0xff]  ;;  %p208_p7 = scmp.lt.s32.totalorder %s825_s15, 1  ;;  %vm433_vm0 = vcmask 64512  }
  0x34   : > { %256 = vxpose.xlu0.b32.start [1/16] %v217_v0, 128  ;;  %v233_v2 = vld [vmem:[%s1086_s1] sm:$0xff]  ;;  %v234_v3 = vld [vmem:[%s1086_s1 + $0x8] sm:$0xff]  ;;  %v219_v4 = vld [vmem:[%s955_s8 + $0x10] sm:$0xff] }
  0x35   : > { %v648_v5 = vpack.c.bf16 %v234_v3, %v233_v2  ;;  %v235_v6 = vld [vmem:[%s1086_s1 + $0x10] sm:$0xff]  ;;  %v236_v7 = vld [vmem:[%s1086_s1 + $0x18] sm:$0xff]  ;;  %v237_v9 = vld [vmem:[%s1086_s1 + $0x20] sm:$0xff]  ;;  %s1100_s15 = smov (!%p208_p7, %s825_s15), 1 }
  0x36   : > { %v652_v8 = vpack.c.bf16 %v236_v7, %v235_v6  ;;  %v238_v10 = vld [vmem:[%s1086_s1 + $0x28] sm:$0xff]  ;;  %v220_v11 = vld [vmem:[%s955_s8 + $0x18] sm:$0xff]  ;;  %v239_v13 = vld [vmem:[%s1086_s1 + $0x30] sm:$0xff] }
  0x37   : > { %649 = vmatprep.subr.bf16.mxu0 %v648_v5  ;;  %680 = vmatprep.subr.bf16.mxu1 %v648_v5  ;;  %v656_v12 = vpack.c.bf16 %v238_v10, %v237_v9  ;;  %v240_v14 = vld [vmem:[%s1086_s1 + $0x38] sm:$0xff]  ;;  %v221_v15 = vld [vmem:[%s955_s8 + $0x20] sm:$0xff]  ;;  %v242_v18 = vld [vmem:[%s1086_s1 + $0x48] sm:$0xff] }
  0x38   : > { %257 = vxpose.xlu0.b32.cont [2/16] %v218_v1, 128  ;;  %651 = vmatpush3.bf16.msra.mxu0 %v648_v5  ;;  %v660_v16 = vpack.c.bf16 %v240_v14, %v239_v13  ;;  %v241_v17 = vld [vmem:[%s1086_s1 + $0x40] sm:$0xff]  ;;  %v222_v19 = vld [vmem:[%s955_s8 + $0x28] sm:$0xff]  ;;  %v243_v21 = vld [vmem:[%s1086_s1 + $0x50] sm:$0xff] }
  0x39   : > { %653 = vmatprep.subr.bf16.mxu0 %v652_v8  ;;  %688 = vmatpush3.bf16.msra.mxu1 %v648_v5  ;;  %v664_v20 = vpack.c.bf16 %v242_v18, %v241_v17  ;;  %v244_v22 = vld [vmem:[%s1086_s1 + $0x58] sm:$0xff]  ;;  %v223_v23 = vld [vmem:[%s955_s8 + $0x30] sm:$0xff]  ;;  %v245_v25 = vld [vmem:[%s1086_s1 + $0x60] sm:$0xff] }
  0x3a   : > { %681 = vmatprep.subr.bf16.mxu1 %v652_v8  ;;  %v668_v24 = vpack.c.bf16 %v244_v22, %v243_v21  ;;  %v246_v26 = vld [vmem:[%s1086_s1 + $0x68] sm:$0xff]  ;;  %v224_v27 = vld [vmem:[%s955_s8 + $0x38] sm:$0xff]  ;;  %v247_v29 = vld [vmem:[%s1086_s1 + $0x70] sm:$0xff] }
  0x3b   : > { %v672_v28 = vpack.c.bf16 %v246_v26, %v245_v25  ;;  %v248_v30 = vld [vmem:[%s1086_s1 + $0x78] sm:$0xff]  ;;  %v225_v31 = vld [vmem:[%s955_s8 + $0x40] sm:$0xff]  ;;  %v226_v33 = vld [vmem:[%s955_s8 + $0x48] sm:$0xff] }
  0x3c   : > { %258 = vxpose.xlu0.b32.cont [3/16] %v219_v4, 128  ;;  %655 = vmatpush3.bf16.msra.mxu0 %v652_v8  ;;  %v676_v32 = vpack.c.bf16 %v248_v30, %v247_v29  ;;  %v227_v34 = vld [vmem:[%s955_s8 + $0x50] sm:$0xff]  ;;  %v228_v35 = vld [vmem:[%s955_s8 + $0x58] sm:$0xff]  ;;  %v229_v36 = vld [vmem:[%s955_s8 + $0x60] sm:$0xff] }
  0x3d   : > { %657 = vmatprep.subr.bf16.mxu0 %v656_v12  ;;  %689 = vmatpush3.bf16.msra.mxu1 %v652_v8  ;;  %v230_v37 = vld [vmem:[%s955_s8 + $0x68] sm:$0xff]  ;;  %v231_v38 = vld [vmem:[%s955_s8 + $0x70] sm:$0xff]  ;;  %v232_v39 = vld [vmem:[%s955_s8 + $0x78] sm:$0xff]  ;;  %s559_s8 = sshll.u32 %s1100_s15, 7 }
  0x3e   : > { %682 = vmatprep.subr.bf16.mxu1 %v656_v12  ;;  %v555_v56 = vld [vmem:[%s1087_s2] ss:$0 sm:$0xff]  ;;  %s1033_s29 = scalar_lea.vmem %s1088_s3, %s559_s8 }
  0x40   : > { %259 = vxpose.xlu0.b32.cont [4/16] %v220_v11, 128  ;;  %659 = vmatpush3.bf16.msra.mxu0 %v656_v12 }
  0x41   : > { %661 = vmatprep.subr.bf16.mxu0 %v660_v16  ;;  %690 = vmatpush3.bf16.msra.mxu1 %v656_v12 }
  0x42   : > { %683 = vmatprep.subr.bf16.mxu1 %v660_v16 }
  0x44   : > { %260 = vxpose.xlu0.b32.cont [5/16] %v221_v15, 128  ;;  %663 = vmatpush3.bf16.msra.mxu0 %v660_v16 }
  0x45   : > { %665 = vmatprep.subr.bf16.mxu0 %v664_v20  ;;  %691 = vmatpush3.bf16.msra.mxu1 %v660_v16 }
  0x46   : > { %684 = vmatprep.subr.bf16.mxu1 %v664_v20 }
  0x48   : > { %261 = vxpose.xlu0.b32.cont [6/16] %v222_v19, 128  ;;  %667 = vmatpush3.bf16.msra.mxu0 %v664_v20 }
  0x49   : > { %669 = vmatprep.subr.bf16.mxu0 %v668_v24  ;;  %692 = vmatpush3.bf16.msra.mxu1 %v664_v20 }
  0x4a   : > { %685 = vmatprep.subr.bf16.mxu1 %v668_v24 }
  0x4c   : > { %262 = vxpose.xlu0.b32.cont [7/16] %v223_v23, 128  ;;  %671 = vmatpush3.bf16.msra.mxu0 %v668_v24 }
  0x4d   : > { %673 = vmatprep.subr.bf16.mxu0 %v672_v28  ;;  %693 = vmatpush3.bf16.msra.mxu1 %v668_v24 }
  0x4e   : > { %686 = vmatprep.subr.bf16.mxu1 %v672_v28 }
  0x50   : > { %263 = vxpose.xlu0.b32.cont [8/16] %v224_v27, 128  ;;  %675 = vmatpush3.bf16.msra.mxu0 %v672_v28 }
  0x51   : > { %677 = vmatprep.subr.bf16.mxu0 %v676_v32  ;;  %694 = vmatpush3.bf16.msra.mxu1 %v672_v28 }
  0x52   : > { %687 = vmatprep.subr.bf16.mxu1 %v676_v32 }
  0x54   : > { %264 = vxpose.xlu0.b32.cont [9/16] %v225_v31, 128  ;;  %679 = vmatpush3.bf16.msra.mxu0 %v676_v32 }
  0x55   : > { %695 = vmatpush3.bf16.msra.mxu1 %v676_v32 }
  0x58   : > { %265 = vxpose.xlu0.b32.cont [10/16] %v226_v33, 128 }
  0x5c   : > { %266 = vxpose.xlu0.b32.cont [11/16] %v227_v34, 128 }
  0x60   : > { %267 = vxpose.xlu0.b32.cont [12/16] %v228_v35, 128 }
  0x64   : > { %268 = vxpose.xlu0.b32.cont [13/16] %v229_v36, 128 }
  0x68   : > { %269 = vxpose.xlu0.b32.cont [14/16] %v230_v37, 128 }
  0x6c   : > { %270 = vxpose.xlu0.b32.cont [15/16] %v231_v38, 128 }
  0x70   : > { %271 = vxpose.xlu0.b32.end [16/16] %v232_v39, 128 }
  0xb4   : > { %v272_v40 = vpop.trf.xlu0 }
  0xb5   : > { %624 = vmatprep.mubr.f32.mxu0 %v272_v40 }
  0xb8   : > { %v273_v41 = vpop.trf.xlu0 }
  0xb9   : > { %625 = vmatmul.mubr.f32.vlgmr.msra.gmra.mrb[0].mxu0 %v273_v41 }
  0xbc   : > { %v274_v42 = vpop.trf.xlu0 }
  0xbd   : > { %627 = vmatprep.mubr.f32.mxu0 %v274_v42 }
  0xc0   : > { %v275_v43 = vpop.trf.xlu0 }
  0xc1   : > { %628 = vmatmul.mubr.f32.gmra.mrb[2].mxu0 %v275_v43 }
  0xc4   : > { %v276_v44 = vpop.trf.xlu0 }
  0xc5   : > { %630 = vmatprep.mubr.f32.mxu0 %v276_v44 }
  0xc8   : > { %v277_v45 = vpop.trf.xlu0 }
  0xc9   : > { %631 = vmatmul.mubr.f32.gmra.mrb[4].mxu0 %v277_v45 }
  0xcc   : > { %v278_v46 = vpop.trf.xlu0 }
  0xcd   : > { %633 = vmatprep.mubr.f32.mxu0 %v278_v46 }
  0xd0   : > { %v279_v47 = vpop.trf.xlu0 }
  0xd1   : > { %634 = vmatmul.mubr.f32.gmra.mrb[6].mxu0 %v279_v47 }
  0xd4   : > { %v280_v48 = vpop.trf.xlu0 }
  0xd5   : > { %636 = vmatprep.mubr.f32.mxu1 %v280_v48 }
  0xd8   : > { %v281_v49 = vpop.trf.xlu0 }
  0xd9   : > { %637 = vmatmul.mubr.f32.vlgmr.msra.gmra.mrb[0].mxu1 %v281_v49 }
  0xdc   : > { %v282_v50 = vpop.trf.xlu0 }
  0xdd   : > { %639 = vmatprep.mubr.f32.mxu1 %v282_v50 }
  0xe0   : > { %v283_v51 = vpop.trf.xlu0 }
  0xe1   : > { %640 = vmatmul.mubr.f32.gmra.mrb[2].mxu1 %v283_v51 }
  0xe4   : > { %v284_v52 = vpop.trf.xlu0 }
  0xe5   : > { %642 = vmatprep.mubr.f32.mxu1 %v284_v52 }
  0xe8   : > { %v285_v53 = vpop.trf.xlu0 }
  0xe9   : > { %643 = vmatmul.mubr.f32.gmra.mrb[4].mxu1 %v285_v53 }
  0xec   : > { %v286_v54 = vpop.trf.xlu0 }
  0xed   : > { %645 = vmatprep.mubr.f32.mxu1 %v286_v54 }
  0xf0   : > { %v287_v55 = vpop.trf.xlu0 }
  0xf1   : > { %646 = vmatmul.mubr.f32.gmra.mrb[6].mxu1 %v287_v55 }
 0x18c   : > { %v626_v57 = vpop.f32.mrb[0].mxu0 }
 0x18d   : > { %v360_v58 = vadd.f32 %v626_v57, %v555_v56  ;;  %v354_v59 = vpop.f32.mrb[1].mxu0 }
 0x18e   : > { %v355_v60 = vadd.f32 %v555_v56, %v354_v59 }
 0x18f   : > { %435 = vst.msk [vmem:[%s1033_s29 + $0x8] sm:$0xff] %vm433_vm0, %v360_v58 }
 0x190   : > { %434 = vst.msk [vmem:[%s1033_s29] sm:$0xff] %vm433_vm0, %v355_v60 }
 0x194   : > { %v629_v61 = vpop.f32.mrb[2].mxu0 }
 0x195   : > { %v370_v62 = vadd.f32 %v629_v61, %v555_v56  ;;  %v364_v63 = vpop.f32.mrb[3].mxu0 }
 0x196   : > { %v365_v0 = vadd.f32 %v555_v56, %v364_v63 }
 0x197   : > { %437 = vst.msk [vmem:[%s1033_s29 + $0x18] sm:$0xff] %vm433_vm0, %v370_v62 }
 0x198   : > { %436 = vst.msk [vmem:[%s1033_s29 + $0x10] sm:$0xff] %vm433_vm0, %v365_v0 }
 0x19c   : > { %v632_v1 = vpop.f32.mrb[4].mxu0 }
 0x19d   : > { %v380_v2 = vadd.f32 %v632_v1, %v555_v56  ;;  %v374_v3 = vpop.f32.mrb[5].mxu0 }
 0x19e   : > { %v375_v4 = vadd.f32 %v555_v56, %v374_v3 }
 0x19f   : > { %439 = vst.msk [vmem:[%s1033_s29 + $0x28] sm:$0xff] %vm433_vm0, %v380_v2 }
 0x1a0   : > { %438 = vst.msk [vmem:[%s1033_s29 + $0x20] sm:$0xff] %vm433_vm0, %v375_v4 }
 0x1a4   : > { %v635_v5 = vpop.f32.mrb[6].mxu0 }
 0x1a5   : > { %v390_v6 = vadd.f32 %v635_v5, %v555_v56  ;;  %v384_v7 = vpop.f32.mrb[7].mxu0 }
 0x1a6   : > { %v385_v8 = vadd.f32 %v555_v56, %v384_v7 }
 0x1a7   : > { %441 = vst.msk [vmem:[%s1033_s29 + $0x38] sm:$0xff] %vm433_vm0, %v390_v6 }
 0x1a8   : > { %440 = vst.msk [vmem:[%s1033_s29 + $0x30] sm:$0xff] %vm433_vm0, %v385_v8 }
 0x1ac   : > { %v638_v9 = vpop.f32.mrb[0].mxu1 }
 0x1ad   : > { %v400_v10 = vadd.f32 %v638_v9, %v555_v56  ;;  %v394_v11 = vpop.f32.mrb[1].mxu1 }
 0x1ae   : > { %v395_v12 = vadd.f32 %v555_v56, %v394_v11 }
 0x1af   : > { %443 = vst.msk [vmem:[%s1033_s29 + $0x48] sm:$0xff] %vm433_vm0, %v400_v10 }
 0x1b0   : > { %442 = vst.msk [vmem:[%s1033_s29 + $0x40] sm:$0xff] %vm433_vm0, %v395_v12 }
 0x1b4   : > { %v641_v13 = vpop.f32.mrb[2].mxu1 }
 0x1b5   : > { %v410_v14 = vadd.f32 %v641_v13, %v555_v56  ;;  %v404_v15 = vpop.f32.mrb[3].mxu1 }
 0x1b6   : > { %v405_v16 = vadd.f32 %v555_v56, %v404_v15 }
 0x1b7   : > { %445 = vst.msk [vmem:[%s1033_s29 + $0x58] sm:$0xff] %vm433_vm0, %v410_v14 }
 0x1b8   : > { %444 = vst.msk [vmem:[%s1033_s29 + $0x50] sm:$0xff] %vm433_vm0, %v405_v16 }
 0x1bc   : > { %v644_v17 = vpop.f32.mrb[4].mxu1 }
 0x1bd   : > { %v420_v18 = vadd.f32 %v644_v17, %v555_v56  ;;  %v414_v19 = vpop.f32.mrb[5].mxu1 }
 0x1be   : > { %v415_v20 = vadd.f32 %v555_v56, %v414_v19 }
 0x1bf   : > { %447 = vst.msk [vmem:[%s1033_s29 + $0x68] sm:$0xff] %vm433_vm0, %v420_v18 }
 0x1c0   : > { %446 = vst.msk [vmem:[%s1033_s29 + $0x60] sm:$0xff] %vm433_vm0, %v415_v20 }
 0x1c4   : > { %v647_v21 = vpop.f32.mrb[6].mxu1 }
 0x1c5   : > { %v430_v22 = vadd.f32 %v647_v21, %v555_v56  ;;  %v424_v23 = vpop.f32.mrb[7].mxu1 }
 0x1c6   : > { %v425_v24 = vadd.f32 %v555_v56, %v424_v23 }
 0x1c7   : > { %449 = vst.msk [vmem:[%s1033_s29 + $0x78] sm:$0xff] %vm433_vm0, %v430_v22 }
 0x1c8   : > { %448 = vst.msk [vmem:[%s1033_s29 + $0x70] sm:$0xff] %vm433_vm0, %v425_v24 }
 0x1c9 PF: > { %s16_s17 = sadd.s32 1, %s833_s17   ;;  %s1092_s12 = smov %s817_s13 }
 0x1ca   : > { %p13_p9 = scmp.ge.s32.totalorder %s16_s17, 4   ;;  %s1093_s13 = smov %s821_s14 }
 0x1cb   : > { %s1094_s14 = smov %s907_s24  ;;  %s1095_s15 = smov %s829_s16 }
 0x1cc   : > { %s1096_s16 = smov %s1098_s19  ;;  %15 = sbr.rel (!%p13_p9) target bundleno = 4 (0x4), region = 72 }
 0x1d3   :  { %480 = vsyncpa [#allocation3], 1 }
 0x1d4   :  { %482 = vsyncpa [#allocation3 + $0x1], 1 }

</bundles_post_ra>
